<compile_context>
chip_gen: v5e
topology: v5e:2x2
jax: 0.10.0
libtpu: 0.0.40
codegen_flags: <defaults>
</compile_context>

<pallas_src>
import functools

import jax
import jax.numpy as jnp
from jax.experimental import pallas as pl
from jax.experimental.pallas import tpu as pltpu


def _resnet_block_kernel(x_ref, w1_ref, w2_ref, o_ref, *,
                         K, pad_left, pad_right, skip_connection):
    """Fused ResNet block for one block of batch elements (NCL layout).

    x_ref  : (Bblk, Cin, L)     raw (unpadded) input block
    w1_ref : (Cout, K*Cin)      conv1 weights, im2col layout (row = k*Cin + cin)
    w2_ref : (Cout, K*Cout)     conv2 weights, im2col layout (row = k*Cout + cout)
    o_ref  : (Bblk, Cout, L)
    """
    Bblk, Cin, L = x_ref.shape
    Cout = o_ref.shape[1]

    x_raw = x_ref[...].astype(jnp.float32)          # original input, kept for the skip

    # Weights are tiny; broadcast once per grid step so each conv is a single batched
    # (Bblk, Cout, F) @ (Bblk, F, L) contraction on the MXU.
    w1b = jnp.broadcast_to(w1_ref[...][None], (Bblk, Cout, K * Cin))
    w2b = jnp.broadcast_to(w2_ref[...][None], (Bblk, Cout, K * Cout))

    def pad_lanes(a):
        # Spatial zero padding built in-kernel (no wrapper jnp.pad / extra HBM pass).
        # ReLU(0) == 0, so padding the already-ReLU'd tensor matches the module order
        # (ConstantPad1d after ReLU/Dropout).
        C = a.shape[1]
        pieces = []
        if pad_left:
            pieces.append(jnp.zeros((Bblk, C, pad_left), jnp.float32))
        pieces.append(a)
        if pad_right:
            pieces.append(jnp.zeros((Bblk, C, pad_right), jnp.float32))
        return jnp.concatenate(pieces, axis=2) if len(pieces) > 1 else a

    def conv(a, wb):
        # a: (Bblk, C, L), already ReLU'd.  One im2col build + one batched contraction.
        ap = pad_lanes(a)                                             # (Bblk, C, L+K-1)
        u = jnp.concatenate([ap[:, :, k:k + L] for k in range(K)],
                            axis=1)                                   # (Bblk, K*C, L)
        return jnp.einsum("bof,bfl->bol", wb, u,
                          preferred_element_type=jnp.float32)         # (Bblk, Cout, L)

    # ReLU -> (dropout = identity in eval) -> conv1 -> ReLU -> (dropout) -> conv2
    h = conv(jnp.maximum(x_raw, 0.0), w1b)
    out = conv(jnp.maximum(h, 0.0), w2b)

    # Skip connection uses the ORIGINAL x, channel-padded / truncated to Cout.
    if skip_connection:
        if Cout == Cin:
            out = out + x_raw
        elif Cout > Cin:
            out = out + jnp.concatenate(
                [x_raw, jnp.zeros((Bblk, Cout - Cin, L), jnp.float32)], axis=1)
        else:
            out = out + x_raw[:, :Cout, :]

    o_ref[...] = out.astype(o_ref.dtype)


def _tensorcores_per_chip():
    """>=2 TensorCores per chip (v7x, v4/v5p megacore) -> keep >=2 parallel grid blocks."""
    try:
        kind = jax.devices()[0].device_kind.lower()
    except Exception:
        return 1
    return 2 if any(t in kind for t in ("v7", "v4", "v5p")) else 1


def _vmem_budget_bytes():
    try:
        cap = int(pltpu.get_tpu_info().vmem_capacity_bytes)
    except Exception:
        cap = 64 << 20
    # Stay well under the scoped-VMEM default on all generations (16-32 MiB).
    return min(cap // 4, 16 << 20)


def _pick_block_b(B, Cin, Cout, L, K, *, min_blocks):
    # Rough per-batch-element per-step f32 footprint: double-buffered I/O blocks plus the
    # in-kernel padded / im2col / output intermediates.
    bytes_per_b = 4 * L * (2 * Cin + 2 * Cout          # pipelined in/out blocks
                           + Cin + K * Cin             # relu+pad input, conv1 im2col
                           + Cout + K * Cout           # relu+pad hidden, conv2 im2col
                           + 2 * Cout)                 # conv outputs / skip temp
    cap = max(1, _vmem_budget_bytes() // max(bytes_per_b, 1))
    target = max(1, min(B, cap))
    if min_blocks > 1:
        target = min(target, max(1, B // min_blocks))
    # largest divisor of B that is <= target
    return next(d for d in range(target, 0, -1) if B % d == 0)


def resnet_block(x, w_conv1, w_conv2, *, skip_connection=True, dropout_rate=0.0,
                 block_b=None):
    """ResNet_Block.forward (eval mode).

    x       : (B, Cin, L)     float32, PyTorch NCL layout
    w_conv1 : (Cout, Cin, K)  nn.Conv1d weight (bias=False)
    w_conv2 : (Cout, Cout, K) nn.Conv1d weight (bias=False)
    returns (B, Cout, L)
    """
    del dropout_rate  # eval-mode forward: dropout is identity
    B, Cin, L = x.shape
    Cout, _, K = w_conv1.shape
    assert w_conv2.shape == (Cout, Cout, K)

    pad = K - 1
    pad_left = pad // 2
    pad_right = pad - pad_left

    # im2col weight layout: row index = k * C_in + c_in (tap-major).
    w1_2d = jnp.transpose(w_conv1, (0, 2, 1)).reshape(Cout, K * Cin)
    w2_2d = jnp.transpose(w_conv2, (0, 2, 1)).reshape(Cout, K * Cout)

    if block_b is None:
        block_b = _pick_block_b(B, Cin, Cout, L, K, min_blocks=_tensorcores_per_chip())
    assert B % block_b == 0
    grid = (B // block_b,)

    kernel = functools.partial(
        _resnet_block_kernel,
        K=K, pad_left=pad_left, pad_right=pad_right, skip_connection=skip_connection)

    return pl.pallas_call(
        kernel,
        out_shape=jax.ShapeDtypeStruct((B, Cout, L), x.dtype),
        grid=grid,
        in_specs=[
            pl.BlockSpec((block_b, Cin, L), lambda i: (i, 0, 0)),
            pl.BlockSpec((Cout, K * Cin), lambda i: (0, 0)),
            pl.BlockSpec((Cout, K * Cout), lambda i: (0, 0)),
        ],
        out_specs=pl.BlockSpec((block_b, Cout, L), lambda i: (i, 0, 0)),
        compiler_params=pltpu.CompilerParams(dimension_semantics=("parallel",)),
    )(x, w1_2d, w2_2d)


def reference(x, w_conv1, w_conv2, skip_connection=True):
    """Pure-JAX reference mirroring the PyTorch forward (eval mode)."""
    K = w_conv1.shape[2]
    pad = K - 1
    pl_, pr_ = pad // 2, pad - pad // 2

    out = jnp.maximum(x, 0.0)
    out = jnp.pad(out, ((0, 0), (0, 0), (pl_, pr_)))
    out = jax.lax.conv_general_dilated(
        out, w_conv1, window_strides=(1,), padding="VALID",
        dimension_numbers=("NCH", "OIH", "NCH"))
    out = jnp.maximum(out, 0.0)
    out = jnp.pad(out, ((0, 0), (0, 0), (pl_, pr_)))
    out = jax.lax.conv_general_dilated(
        out, w_conv2, window_strides=(1,), padding="VALID",
        dimension_numbers=("NCH", "OIH", "NCH"))

    if skip_connection:
        Cout, Cin = out.shape[1], x.shape[1]
        if Cout == Cin:
            out = out + x
        elif Cout > Cin:
            out = out + jnp.pad(x, ((0, 0), (0, Cout - Cin), (0, 0)))
        else:
            out = out + x[:, :Cout]
    return out


if __name__ == "__main__":
    # Small shapes consistent with the module: Conv1d over (B, Cin, L), skip with channel pad.
    B, Cin, Cout, L, K = 4, 4, 8, 128, 3

    key = jax.random.PRNGKey(0)
    kx, k1, k2 = jax.random.split(key, 3)

    x = jax.random.normal(kx, (B, Cin, L), dtype=jnp.float32)

    # Deterministic init (uniform +-1/sqrt(fan_in), like nn.Conv1d default; bias=False).
    bound1 = 1.0 / (Cin * K) ** 0.5
    w_conv1 = jax.random.uniform(k1, (Cout, Cin, K), jnp.float32, -bound1, bound1)
    bound2 = 1.0 / (Cout * K) ** 0.5
    w_conv2 = jax.random.uniform(k2, (Cout, Cout, K), jnp.float32, -bound2, bound2)

    out = resnet_block(x, w_conv1, w_conv2, skip_connection=True, dropout_rate=0.1)
    out = jax.block_until_ready(out)

    ref = jax.block_until_ready(reference(x, w_conv1, w_conv2, skip_connection=True))
    assert out.shape == (B, Cout, L), out.shape
    assert jnp.allclose(out, ref, rtol=1e-3, atol=1e-3), "mismatch vs reference"

    print("KERNEL_OK")
</pallas_src>

<mosaic_0001>
module attributes {stable_mosaic.version = 11 : i64} {
  func.func @_resnet_block_kernel(%arg0: i32, %arg1: memref<4x4x128xf32, #tpu.memory_space<vmem>>, %arg2: memref<8x12xf32, #tpu.memory_space<vmem>>, %arg3: memref<8x24xf32, #tpu.memory_space<vmem>>, %arg4: memref<4x8x128xf32, #tpu.memory_space<vmem>>) attributes {dimension_semantics = [#tpu.dimension_semantics<parallel>], iteration_bounds = array<i64: 1>, scalar_prefetch = 0 : i64, scratch_operands = 0 : i64, tpu.core_type = #tpu.core_type<tc>, window_params = [{transform_indices = @transform_0, window_bounds = array<i64: 4, 4, 128>}, {pipeline_mode = #tpu.pipeline_mode<synchronous>, transform_indices = @transform_1, window_bounds = array<i64: 8, 12>}, {pipeline_mode = #tpu.pipeline_mode<synchronous>, transform_indices = @transform_2, window_bounds = array<i64: 8, 24>}, {transform_indices = @transform_3, window_bounds = array<i64: 4, 8, 128>}]} {
    %c0 = arith.constant 0 : index
    %c0_0 = arith.constant 0 : index
    %c0_1 = arith.constant 0 : index
    %0 = vector.load %arg1[%c0, %c0_0, %c0_1] : memref<4x4x128xf32, #tpu.memory_space<vmem>>, vector<4x4x128xf32>
    %c0_2 = arith.constant 0 : index
    %c0_3 = arith.constant 0 : index
    %1 = vector.load %arg2[%c0_2, %c0_3] : memref<8x12xf32, #tpu.memory_space<vmem>>, vector<8x12xf32>
    %2 = vector.shape_cast %1 : vector<8x12xf32> to vector<1x8x12xf32>
    %3 = vector.shape_cast %2 : vector<1x8x12xf32> to vector<1x8x12xf32>
    %4 = vector.broadcast %3 : vector<1x8x12xf32> to vector<4x8x12xf32>
    %c0_4 = arith.constant 0 : index
    %c0_5 = arith.constant 0 : index
    %5 = vector.load %arg3[%c0_4, %c0_5] : memref<8x24xf32, #tpu.memory_space<vmem>>, vector<8x24xf32>
    %6 = vector.shape_cast %5 : vector<8x24xf32> to vector<1x8x24xf32>
    %7 = vector.shape_cast %6 : vector<1x8x24xf32> to vector<1x8x24xf32>
    %8 = vector.broadcast %7 : vector<1x8x24xf32> to vector<4x8x24xf32>
    %cst = arith.constant 0.000000e+00 : f32
    %9 = vector.broadcast %cst : f32 to vector<4x4x128xf32>
    %10 = arith.maximumf %0, %9 : vector<4x4x128xf32>
    %cst_6 = arith.constant 0.000000e+00 : f32
    %11 = vector.broadcast %cst_6 : f32 to vector<4x4x1xf32>
    %cst_7 = arith.constant 0.000000e+00 : f32
    %12 = vector.broadcast %cst_7 : f32 to vector<4x4x1xf32>
    %13 = tpu.concatenate %11, %10, %12 in 2 : vector<4x4x1xf32>, vector<4x4x128xf32>, vector<4x4x1xf32> -> vector<4x4x130xf32>
    %14 = vector.extract_strided_slice %13 {offsets = [0, 0, 0], sizes = [4, 4, 128], strides = [1, 1, 1]} : vector<4x4x130xf32> to vector<4x4x128xf32>
    %15 = vector.extract_strided_slice %13 {offsets = [0, 0, 1], sizes = [4, 4, 128], strides = [1, 1, 1]} : vector<4x4x130xf32> to vector<4x4x128xf32>
    %16 = vector.extract_strided_slice %13 {offsets = [0, 0, 2], sizes = [4, 4, 128], strides = [1, 1, 1]} : vector<4x4x130xf32> to vector<4x4x128xf32>
    %17 = tpu.concatenate %14, %15, %16 in 1 : vector<4x4x128xf32>, vector<4x4x128xf32>, vector<4x4x128xf32> -> vector<4x12x128xf32>
    "tpu.trace_start"() <{level = 10 : i32, message = "bof,bfl->bol"}> : () -> ()
    %cst_8 = arith.constant dense<0.000000e+00> : vector<4x8x128xf32>
    %18 = tpu.matmul %4, %17, %cst_8 {dimension_numbers = #tpu.dot_dimension_numbers<[2], [1], [1], [2], [0, 0, 0, 1, 1, 2], [0], [0]>} : vector<4x8x12xf32>, vector<4x12x128xf32>, vector<4x8x128xf32> -> vector<4x8x128xf32>
    "tpu.trace_stop"() : () -> ()
    %cst_9 = arith.constant 0.000000e+00 : f32
    %19 = vector.broadcast %cst_9 : f32 to vector<4x8x128xf32>
    %20 = arith.maximumf %18, %19 : vector<4x8x128xf32>
    %cst_10 = arith.constant 0.000000e+00 : f32
    %21 = vector.broadcast %cst_10 : f32 to vector<4x8x1xf32>
    %cst_11 = arith.constant 0.000000e+00 : f32
    %22 = vector.broadcast %cst_11 : f32 to vector<4x8x1xf32>
    %23 = tpu.concatenate %21, %20, %22 in 2 : vector<4x8x1xf32>, vector<4x8x128xf32>, vector<4x8x1xf32> -> vector<4x8x130xf32>
    %24 = vector.extract_strided_slice %23 {offsets = [0, 0, 0], sizes = [4, 8, 128], strides = [1, 1, 1]} : vector<4x8x130xf32> to vector<4x8x128xf32>
    %25 = vector.extract_strided_slice %23 {offsets = [0, 0, 1], sizes = [4, 8, 128], strides = [1, 1, 1]} : vector<4x8x130xf32> to vector<4x8x128xf32>
    %26 = vector.extract_strided_slice %23 {offsets = [0, 0, 2], sizes = [4, 8, 128], strides = [1, 1, 1]} : vector<4x8x130xf32> to vector<4x8x128xf32>
    %27 = tpu.concatenate %24, %25, %26 in 1 : vector<4x8x128xf32>, vector<4x8x128xf32>, vector<4x8x128xf32> -> vector<4x24x128xf32>
    "tpu.trace_start"() <{level = 10 : i32, message = "bof,bfl->bol"}> : () -> ()
    %cst_12 = arith.constant dense<0.000000e+00> : vector<4x8x128xf32>
    %28 = tpu.matmul %8, %27, %cst_12 {dimension_numbers = #tpu.dot_dimension_numbers<[2], [1], [1], [2], [0, 0, 0, 1, 1, 2], [0], [0]>} : vector<4x8x24xf32>, vector<4x24x128xf32>, vector<4x8x128xf32> -> vector<4x8x128xf32>
    %cst_13 = arith.constant 0.000000e+00 : f32
    "tpu.trace_stop"() : () -> ()
    %29 = vector.broadcast %cst_13 : f32 to vector<4x4x128xf32>
    %30 = tpu.concatenate %0, %29 in 1 : vector<4x4x128xf32>, vector<4x4x128xf32> -> vector<4x8x128xf32>
    %31 = arith.addf %28, %30 : vector<4x8x128xf32>
    %c0_14 = arith.constant 0 : index
    %c0_15 = arith.constant 0 : index
    %c0_16 = arith.constant 0 : index
    %32 = vector.load %arg4[%c0_14, %c0_15, %c0_16] : memref<4x8x128xf32, #tpu.memory_space<vmem>>, vector<4x8x128xf32>
    tpu.vector_store %arg4[%c0_14, %c0_15, %c0_16], %31 {strides = array<i32>} : memref<4x8x128xf32, #tpu.memory_space<vmem>>, vector<4x8x128xf32>,
    return
  }
  func.func @transform_0(%arg0: i32) -> (i32, i32, i32) {
    %c0_i32 = arith.constant 0 : i32
    %c0_i32_0 = arith.constant 0 : i32
    %c0_i32_1 = arith.constant 0 : i32
    return %arg0, %c0_i32, %c0_i32_0 : i32, i32, i32
  }
  func.func @transform_1(%arg0: i32) -> (i32, i32) {
    %c0_i32 = arith.constant 0 : i32
    %c0_i32_0 = arith.constant 0 : i32
    %c0_i32_1 = arith.constant 0 : i32
    return %c0_i32, %c0_i32_0 : i32, i32
  }
  func.func @transform_2(%arg0: i32) -> (i32, i32) {
    %c0_i32 = arith.constant 0 : i32
    %c0_i32_0 = arith.constant 0 : i32
    %c0_i32_1 = arith.constant 0 : i32
    return %c0_i32, %c0_i32_0 : i32, i32
  }
  func.func @transform_3(%arg0: i32) -> (i32, i32, i32) {
    %c0_i32 = arith.constant 0 : i32
    %c0_i32_0 = arith.constant 0 : i32
    %c0_i32_1 = arith.constant 0 : i32
    return %arg0, %c0_i32, %c0_i32_0 : i32, i32, i32
  }
}

</mosaic_0001>

<bundles_post_ra>
// kernel: tpu_custom_call.1
= control target key start
LH: loop header
LB: loop body
LE: loop exit
PB: predicated region body
PF: predicated region fallthrough
CT: control target
= control target key end

     0   :  { %8 = vsyncpa [#allocation3], 0  ;;  %s798_s0 = inlined_call_operand.hbm [shape: f32[4,4,128], index: 0, kind: input, shape index: {}]   ;;  %s799_s1 = inlined_call_operand.hbm [shape: f32[8,12], index: 1, kind: input, shape index: {}]   ;;  %s800_s2 = inlined_call_operand.hbm [shape: f32[8,24], index: 2, kind: input, shape index: {}]   ;;  %s801_s3 = inlined_call_operand.hbm [shape: f32[4,8,128], index: 3, kind: output, shape index: {}]  }
   0x1   :  { %9 = vsyncpa [#allocation6], 0  ;;  %s29_s14 = sshll.u32 %s799_s1, 4  ;;  %s30_s14 = int_to_ptr.hbm [resolvable:$true] %s29_s14 }
   0x2   :  { %10 = vsyncpa [#allocation4], 0  ;;  %s641_s15 = smov [#allocation5]   ;;  %s15_s19 = sshll.u32 %s798_s0, 4  ;;  %s16_s19 = int_to_ptr.hbm [resolvable:$true] %s15_s19 }
   0x3   :  { %s31_s16 = sshll.u32 %s641_s15, 4  ;;  %s642_s20 = smov [#allocation2]   ;;  %s32_s16 = int_to_ptr.vmem [resolvable:$true] %s31_s16 }
   0x4   :  { %34 = dma.hbm_to_vmem [thread:$0]  %s30_s14, 128, %s32_s16, [#allocation6]  }
   0x5   :  { %s17_s21 = sshll.u32 %s642_s20, 4  ;;  %s643_s22 = smov 64   ;;  %s18_s21 = int_to_ptr.vmem [resolvable:$true] %s17_s21 }
   0x6   :  { %s644_s23 = smov 4   ;;  %s40_s1 = sshll.u32 %s800_s2, 4  ;;  %s41_s1 = int_to_ptr.hbm [resolvable:$true] %s40_s1 }
   0x7   :  { %23 = dma.hbm_to_vmem [thread:$0]  %s16_s19, 256, %s18_s21, [#allocation3], %s643_s22, %s643_s22, %s644_s23  }
   0x8   :  { %s645_s26 = smov [#allocation7]  }
   0x9   :  { %s42_s27 = sshll.u32 %s645_s26, 4  ;;  %s43_s27 = int_to_ptr.vmem [resolvable:$true] %s42_s27 }
   0xa   :  { %45 = dma.hbm_to_vmem [thread:$0]  %s41_s1, 128, %s43_s27, [#allocation6]  }
   0xb   :  { %635 = dma.done.wait [#allocation3], 256  }
   0xc   :  { %636 = vsyncadd [#allocation3], 4294967040 }
   0xd   :  { %637 = dma.done.wait [#allocation6], 256  }
   0xe   :  { %638 = vsyncadd [#allocation6], 4294967040  ;;  %v681_v0 = vld [vmem:[#allocation2 + $0x8] sm:$0xf]  ;;  %v683_v1 = vld [vmem:[#allocation2] sm:$0xf] }
   0xf   :  { %v66_v2 = vmax.f32 %v681_v0, 0.0  ;;  %v64_v3 = vmax.f32 %v683_v1, 0.0  ;;  %s646_s0 = smov 1   ;;  %v689_v4 = vld [vmem:[#allocation2 + $0xc] sm:$0xf]  ;;  %vm84_vm0 = vcmask 7168  }
  0x10   :  { %v691_v5 = vld [vmem:[#allocation2 + $0x4] sm:$0xf]  ;;  %v67_v6 = vmax.f32 %v689_v4, 0.0  ;;  %s647_s2 = smov 126   ;;  %s648_s28 = smov 127   ;;  %vm150_vm1 = vcmask 1031168   ;;  %vm765_vm5 = vmneg %vm84_vm0 }
  0x11   :  { %76 = vrot.lane.b32.xlu0 %v66_v2, %s646_s0  ;;  %72 = vrot.lane.b32.xlu1 %v64_v3, %s646_s0  ;;  %v65_v7 = vmax.f32 %v691_v5, 0.0  ;;  %vm155_vm2 = vcmask 1043456   ;;  %vm125_vm3 = vcmask 1039360   ;;  %v62_v39 = vld [vmem:[#allocation5] sm:$0xff]  ;;  %vm160_vm4 = vcmask 97280   ;;  %s649_s29 = smov [#allocation8]  }
  0x12   :  { %vm340_vm6 = vcmask 195584   ;;  %s432_s30 = sshll.u32 %s649_s29, 4  ;;  %s434_s6 = sshll.u32 %s801_s3, 4  ;;  %s433_s30 = int_to_ptr.vmem [resolvable:$true] %s432_s30  ;;  %s435_s6 = int_to_ptr.hbm [resolvable:$true] %s434_s6 }
  0x13   :  { %s650_s7 = smov 128   ;;  %s651_s8 = smov 8  }
  0x19   :  { %78 = vrot.lane.b32.xlu0 %v67_v6, %s646_s0  ;;  %74 = vrot.lane.b32.xlu1 %v65_v7, %s646_s0 }
  0x83   :  { %v77_v8 = vpop.permute.xlu0 %76  ;;  %v73_v14 = vpop.permute.xlu1 %72 }
  0x84   :  { %v87_v9 = vsel %vm84_vm0, 0.0, %v77_v8  ;;  %v91_v11 = vsel %vm84_vm0, %v77_v8, 0.0  ;;  %v85_v21 = vsel %vm84_vm0, 0.0, %v73_v14  ;;  %v89_v25 = vsel %vm84_vm0, %v73_v14, 0.0 }
  0x85   :  { %142 = vrot.lane.b32.xlu2 %v87_v9, %s647_s2  ;;  %v105_v15 = vrot.slane %v87_v9, 4  ;;  %v106_v16 = vrot.slane %v91_v11, 4  ;;  %v101_v26 = vrot.slane %v85_v21, 4  ;;  %v102_v27 = vrot.slane %v89_v25, 4 }
  0x87   :  { %v479_v19 = vpack.i.bf16 %v106_v16, %v105_v15  ;;  %v489_v30 = vpack.i.bf16 %v102_v27, %v101_v26 }
  0x8b   :  { %v79_v10 = vpop.permute.xlu0 %78  ;;  %v75_v22 = vpop.permute.xlu1 %74 }
  0x8c   :  { %v701_v12 = vsel %vm84_vm0, 0.0, %v79_v10  ;;  %v92_v13 = vsel %vm84_vm0, %v79_v10, 0.0  ;;  %v86_v23 = vsel %vm84_vm0, 0.0, %v75_v22  ;;  %v90_v24 = vsel %vm84_vm0, %v75_v22, 0.0 }
  0x8d   :  { %144 = vrot.lane.b32.xlu2 %v91_v11, %s647_s2  ;;  %146 = vrot.lane.b32.xlu0 %v701_v12, %s647_s2  ;;  %v107_v17 = vrot.slane %v701_v12, 4  ;;  %v108_v18 = vrot.slane %v92_v13, 4  ;;  %v104_v28 = vrot.slane %v90_v24, 4  ;;  %v103_v29 = vrot.slane %v86_v23, 4 }
  0x8e   :  { %148 = vrot.lane.b32.xlu1 %v92_v13, %s647_s2 }
  0x8f   :  { %v484_v20 = vpack.i.bf16 %v108_v18, %v107_v17  ;;  %v494_v31 = vpack.i.bf16 %v104_v28, %v103_v29 }
  0x95   :  { %480 = vrot.lane.b32.xlu2 %v479_v19, %s648_s28  ;;  %485 = vrot.lane.b32.xlu0 %v484_v20, %s648_s28 }
  0x96   :  { %134 = vrot.lane.b32.xlu1 %v85_v21, %s647_s2 }
  0x9d   :  { %136 = vrot.lane.b32.xlu2 %v89_v25, %s647_s2  ;;  %138 = vrot.lane.b32.xlu0 %v86_v23, %s647_s2 }
  0x9e   :  { %140 = vrot.lane.b32.xlu1 %v90_v24, %s647_s2 }
  0xa5   :  { %490 = vrot.lane.b32.xlu2 %v489_v30, %s648_s28  ;;  %495 = vrot.lane.b32.xlu0 %v494_v31, %s648_s28 }
  0xdf   :  { %v143_v32 = vpop.permute.xlu2 %142 }
  0xe7   :  { %v145_v33 = vpop.permute.xlu2 %144 }
  0xe8   :  { %v153_v34 = vsel %vm150_vm1, %v143_v32, %v145_v33 }
  0xe9   :  { %452 = vmatpush.msk.msra.mxu2 %vm155_vm2, %v153_v34 }
  0xef   :  { %v481_v35 = vpop.permute.xlu2 %480 }
  0xf0   :  { %v483_v36 = vunpack.i.h.bf16 %v481_v35  ;;  %v482_v37 = vunpack.i.l.bf16 %v481_v35 }
  0xf2   :  { %v128_v38 = vsel %vm125_vm3, %v482_v37, %v483_v36 }
  0xf3   :  { %v158_v40 = vsel %vm155_vm2, %v87_v9, %v128_v38  ;;  %v63_v38 = vld [vmem:[#allocation7] sm:$0xff] }
  0xf4   :  { %225 = vmatpush.msra.mxu2 %v158_v40 }
  0xf5   :  { %453 = vmatmul.msk.f32.vlgmr.msra.gmra.mxu2 %vm160_vm4, %v62_v39 }
  0xf7   :  { %v137_v41 = vpop.permute.xlu2 %136 }
  0xff   :  { %v147_v42 = vpop.permute.xlu0 %146  ;;  %v491_v44 = vpop.permute.xlu2 %490 }
 0x100   :  { %v149_v43 = vpop.permute.xlu1 %148  ;;  %v493_v46 = vunpack.i.h.bf16 %v491_v44  ;;  %v492_v47 = vunpack.i.l.bf16 %v491_v44 }
 0x101   :  { %v154_v45 = vsel %vm150_vm1, %v147_v42, %v149_v43 }
 0x102   :  { %454 = vmatpush.msk.msra.mxu3 %vm155_vm2, %v154_v45  ;;  %v126_v52 = vsel %vm125_vm3, %v492_v47, %v493_v46 }
 0x103   :  { %v156_v55 = vsel %vm155_vm2, %v85_v21, %v126_v52 }
 0x107   :  { %v486_v48 = vpop.permute.xlu0 %485 }
 0x108   :  { %v488_v49 = vunpack.i.h.bf16 %v486_v48  ;;  %v487_v50 = vunpack.i.l.bf16 %v486_v48  ;;  %v135_v51 = vpop.permute.xlu1 %134 }
 0x109   :  { %v151_v53 = vsel %vm150_vm1, %v135_v51, %v137_v41 }
 0x10a   :  { %448 = vmatpush.msk.msra.mxu0 %vm155_vm2, %v151_v53  ;;  %v129_v54 = vsel %vm125_vm3, %v487_v50, %v488_v49 }
 0x10b   :  { %v159_v56 = vsel %vm155_vm2, %v701_v12, %v129_v54 }
 0x10c   :  { %181 = vmatpush.msra.mxu0 %v156_v55  ;;  %247 = vmatpush.msra.mxu3 %v159_v56 }
 0x10d   :  { %449 = vmatmul.msk.f32.vlgmr.msra.gmra.mxu0 %vm160_vm4, %v62_v39  ;;  %455 = vmatmul.msk.f32.vlgmr.msra.gmra.mxu3 %vm160_vm4, %v62_v39 }
 0x10f   :  { %v139_v57 = vpop.permute.xlu0 %138 }
 0x110   :  { %v141_v58 = vpop.permute.xlu1 %140 }
 0x111   :  { %v152_v59 = vsel %vm150_vm1, %v139_v57, %v141_v58 }
 0x112   :  { %450 = vmatpush.msk.msra.mxu1 %vm155_vm2, %v152_v59 }
 0x117   :  { %v496_v60 = vpop.permute.xlu0 %495 }
 0x118   :  { %v498_v61 = vunpack.i.h.bf16 %v496_v60  ;;  %v497_v62 = vunpack.i.l.bf16 %v496_v60 }
 0x11a   :  { %v127_v63 = vsel %vm125_vm3, %v497_v62, %v498_v61 }
 0x11b   :  { %v157_v2 = vsel %vm155_vm2, %v86_v23, %v127_v63  ;;  %v338_v63 = vsel %vm155_vm2, %v681_v0, 0.0  ;;  %v337_v0 = vsel %vm155_vm2, %v691_v5, 0.0 }
 0x11c   :  { %203 = vmatpush.msra.mxu1 %v157_v2 }
 0x11d   :  { %451 = vmatmul.msk.f32.vlgmr.msra.gmra.mxu1 %vm160_vm4, %v62_v39 }
 0x178   :  { %v227_v3 = vpop.f32.mrf.mxu2 }
 0x179   :  { %v254_v6 = vmax.f32 %v227_v3, 0.0 }
 0x17b   :  { %264 = vrot.lane.b32.xlu1 %v254_v6, %s646_s0  ;;  %v336_v6 = vsel %vm155_vm2, %v683_v1, 0.0 }
 0x18a   :  { %v183_v7 = vpop.f32.mrf.mxu0 }
 0x18b   :  { %v252_v8 = vmax.f32 %v183_v7, 0.0 }
 0x18d   :  { %260 = vrot.lane.b32.xlu0 %v252_v8, %s646_s0 }
 0x190   :  { %v249_v9 = vpop.f32.mrf.mxu3 }
 0x191   :  { %v255_v10 = vmax.f32 %v249_v9, 0.0  ;;  %v339_v9 = vsel %vm155_vm2, %v689_v4, 0.0 }
 0x193   :  { %266 = vrot.lane.b32.xlu2 %v255_v10, %s646_s0 }
 0x19a   :  { %v205_v11 = vpop.f32.mrf.mxu1 }
 0x19b   :  { %v253_v12 = vmax.f32 %v205_v11, 0.0 }
 0x19d   :  { %262 = vrot.lane.b32.xlu1 %v253_v12, %s646_s0 }
 0x1ed   :  { %v265_v13 = vpop.permute.xlu1 %264  ;;  %v267_v17 = vpop.permute.xlu2 %266 }
 0x1ee   :  { %v274_v14 = vsel %vm84_vm0, 0.0, %v265_v13  ;;  %v278_v15 = vsel %vm84_vm0, %v265_v13, 0.0  ;;  %v275_v18 = vsel %vm84_vm0, 0.0, %v267_v17  ;;  %v279_v19 = vsel %vm84_vm0, %v267_v17, 0.0 }
 0x1ef   :  { %v514_v16 = vpack.i.bf16 %v278_v15, %v274_v14  ;;  %v519_v20 = vpack.i.bf16 %v279_v19, %v275_v18 }
 0x1f1   :  { %515 = vrot.lane.b32.xlu1 %v514_v16, %s648_s28  ;;  %505 = vrot.lane.b32.xlu2 %v514_v16, %s647_s2 }
 0x1f9   :  { %520 = vrot.lane.b32.xlu2 %v519_v20, %s648_s28 }
 0x1ff   :  { %v261_v21 = vpop.permute.xlu0 %260 }
 0x200   :  { %v272_v22 = vsel %vm84_vm0, 0.0, %v261_v21  ;;  %v276_v23 = vsel %vm84_vm0, %v261_v21, 0.0 }
 0x201   :  { %v499_v24 = vpack.i.bf16 %v276_v23, %v272_v22 }
 0x203   :  { %500 = vrot.lane.b32.xlu0 %v499_v24, %s647_s2  ;;  %530 = vrot.lane.b32.xlu2 %v499_v24, %s648_s28 }
 0x20b   :  { %510 = vrot.lane.b32.xlu0 %v519_v20, %s647_s2 }
 0x20f   :  { %v263_v25 = vpop.permute.xlu1 %262 }
 0x210   :  { %v273_v26 = vsel %vm84_vm0, 0.0, %v263_v25  ;;  %v277_v27 = vsel %vm84_vm0, %v263_v25, 0.0 }
 0x211   :  { %v534_v28 = vpack.i.bf16 %v277_v27, %v273_v26 }
 0x213   :  { %535 = vrot.lane.b32.xlu0 %v534_v28, %s648_s28  ;;  %525 = vrot.lane.b32.xlu1 %v534_v28, %s647_s2 }
 0x24b   :  { %v506_v29 = vpop.permute.xlu2 %505 }
 0x24c   :  { %v508_v30 = vunpack.i.h.bf16 %v506_v29  ;;  %v507_v31 = vunpack.i.l.bf16 %v506_v29 }
 0x24e   :  { %v330_v32 = vsel %vm150_vm1, %v507_v31, %v508_v30 }
 0x24f   :  { %397 = vmatpush.msrb.mxu2 %v330_v32 }
 0x253   :  { %v521_v39 = vpop.permute.xlu2 %520 }
 0x254   :  { %v523_v49 = vunpack.i.h.bf16 %v521_v39  ;;  %v522_v50 = vunpack.i.l.bf16 %v521_v39 }
 0x256   :  { %v307_v54 = vsel %vm125_vm3, %v522_v50, %v523_v49 }
 0x25d   :  { %v531_v40 = vpop.permute.xlu2 %530 }
 0x25e   :  { %v533_v42 = vunpack.i.h.bf16 %v531_v40  ;;  %v532_v43 = vunpack.i.l.bf16 %v531_v40 }
 0x260   :  { %v304_v47 = vsel %vm125_vm3, %v532_v43, %v533_v42 }
 0x263   :  { %v516_v33 = vpop.permute.xlu1 %515 }
 0x264   :  { %v518_v34 = vunpack.i.h.bf16 %v516_v33  ;;  %v517_v35 = vunpack.i.l.bf16 %v516_v33 }
 0x266   :  { %v306_v36 = vsel %vm125_vm3, %v517_v35, %v518_v34 }
 0x267   :  { %398 = vmatpush.msrb.mxu2 %v306_v36 }
 0x269   :  { %463 = vmatpush.msk.msrb.mxu2 %vm765_vm5, %v265_v13 }
 0x26a   :  { %464 = vmatmul.msk.f32.vlgmr.msrb.gmra.mxu2 %vm340_vm6, %v63_v38 }
 0x275   :  { %v501_v41 = vpop.permute.xlu0 %500 }
 0x276   :  { %v503_v44 = vunpack.i.h.bf16 %v501_v41  ;;  %v502_v45 = vunpack.i.l.bf16 %v501_v41 }
 0x278   :  { %v328_v46 = vsel %vm150_vm1, %v502_v45, %v503_v44 }
 0x279   :  { %357 = vmatpush.msrb.mxu0 %v328_v46 }
 0x27b   :  { %358 = vmatpush.msrb.mxu0 %v304_v47 }
 0x27d   :  { %v511_v48 = vpop.permute.xlu0 %510  ;;  %457 = vmatpush.msk.msrb.mxu0 %vm765_vm5, %v261_v21 }
 0x27e   :  { %v513_v51 = vunpack.i.h.bf16 %v511_v48  ;;  %v512_v52 = vunpack.i.l.bf16 %v511_v48  ;;  %458 = vmatmul.msk.f32.vlgmr.msrb.gmra.mxu0 %vm340_vm6, %v63_v38 }
 0x280   :  { %v331_v53 = vsel %vm150_vm1, %v512_v52, %v513_v51 }
 0x281   :  { %417 = vmatpush.msrb.mxu3 %v331_v53 }
 0x283   :  { %418 = vmatpush.msrb.mxu3 %v307_v54 }
 0x285   :  { %466 = vmatpush.msk.msrb.mxu3 %vm765_vm5, %v267_v17  ;;  %v536_v55 = vpop.permute.xlu0 %535  ;;  %v526_v56 = vpop.permute.xlu1 %525 }
 0x286   :  { %v538_v57 = vunpack.i.h.bf16 %v536_v55  ;;  %v537_v58 = vunpack.i.l.bf16 %v536_v55  ;;  %v528_v59 = vunpack.i.h.bf16 %v526_v56  ;;  %v527_v60 = vunpack.i.l.bf16 %v526_v56  ;;  %467 = vmatmul.msk.f32.vlgmr.msrb.gmra.mxu3 %vm340_vm6, %v63_v38 }
 0x288   :  { %v329_v61 = vsel %vm150_vm1, %v527_v60, %v528_v59  ;;  %v305_v62 = vsel %vm125_vm3, %v537_v58, %v538_v57 }
 0x289   :  { %377 = vmatpush.msrb.mxu1 %v329_v61 }
 0x28b   :  { %378 = vmatpush.msrb.mxu1 %v305_v62 }
 0x28d   :  { %460 = vmatpush.msk.msrb.mxu1 %vm765_vm5, %v263_v25 }
 0x28e   :  { %461 = vmatmul.msk.f32.vlgmr.msrb.gmra.mxu1 %vm340_vm6, %v63_v38 }
 0x2ed   :  { %v401_v2 = vpop.f32.mrf.mxu2 }
 0x2ee   :  { %v402_v3 = vadd.f32 %v401_v2, %v338_v63 }
 0x2f0   :  { %426 = vst [vmem:[#allocation8 + $0x10] sm:$0xff] %v402_v3 }
 0x2fb   :  { %v361_v7 = vpop.f32.mrf.mxu0 }
 0x2fc   :  { %v362_v8 = vadd.f32 %v361_v7, %v336_v6 }
 0x2fe   :  { %424 = vst [vmem:[#allocation8] sm:$0xff] %v362_v8 }
 0x309   :  { %v421_v10 = vpop.f32.mrf.mxu3 }
 0x30a   :  { %v422_v11 = vadd.f32 %v421_v10, %v339_v9 }
 0x30b   :  { %v381_v12 = vpop.f32.mrf.mxu1 }
 0x30c   :  { %v382_v1 = vadd.f32 %v381_v12, %v337_v0  ;;  %427 = vst [vmem:[#allocation8 + $0x18] sm:$0xff] %v422_v11 }
 0x30e   :  { %425 = vst [vmem:[#allocation8 + $0x8] sm:$0xff] %v382_v1 }
 0x30f   :  { %440 = dma.vmem_to_hbm [thread:$0]  %s433_s30, 512, %s435_s6, [#allocation4], %s650_s7, %s650_s7, %s651_s8  }
 0x310   :  { %639 = dma.done.wait [#allocation4], 512  }
 0x311   :  { %640 = vsyncadd [#allocation4], 4294966784 }
 0x312   :  { %445 = vsyncpa [#allocation3], 1 }
 0x313   :  { %446 = vsyncpa [#allocation6], 1 }
 0x314   :  { %447 = vsyncpa [#allocation4], 1 }

</bundles_post_ra>
